<compile_context>
chip_gen: v7x
topology: tpu7x:2x2x1
jax: 0.10.0
libtpu: 0.0.40
codegen_flags: <defaults>
</compile_context>

<pallas_src>
import functools
import math

import jax
import jax.numpy as jnp
from jax import lax
from jax.experimental import pallas as pl
from jax.experimental.pallas import tpu as pltpu


# ----------------------------------------------------------------------------
# Parameter setup (glue, plain JAX)
# ----------------------------------------------------------------------------
def _kaiming_uniform(key, shape, fan_in):
    bound = 1.0 / math.sqrt(fan_in)
    return jax.random.uniform(key, shape, jnp.float32, -bound, bound)


def spectral_normalize(w, n_iter=30, eps=1e-12):
    """Deterministic spectral normalization of a conv weight (Cout, Cin, kH, kW)."""
    w_mat = w.reshape(w.shape[0], -1)
    u = jnp.ones((w_mat.shape[0],), jnp.float32)
    u = u / (jnp.linalg.norm(u) + eps)
    v = jnp.zeros((w_mat.shape[1],), jnp.float32)
    for _ in range(n_iter):
        v = w_mat.T @ u
        v = v / (jnp.linalg.norm(v) + eps)
        u = w_mat @ v
        u = u / (jnp.linalg.norm(u) + eps)
    sigma = u @ (w_mat @ v)
    return w / sigma


def init_gated_resnet_block_params(key, fin, fout, fhidden=None, is_bias=True):
    if fhidden is None:
        fhidden = min(fin, fout)
    ks = jax.random.split(key, 6)
    w0 = _kaiming_uniform(ks[0], (fhidden, fin, 3, 3), fin * 9)
    b0 = _kaiming_uniform(ks[1], (fhidden,), fin * 9)
    w1 = _kaiming_uniform(ks[2], (fout, fhidden, 3, 3), fhidden * 9)
    b1 = (_kaiming_uniform(ks[3], (fout,), fhidden * 9)
          if is_bias else jnp.zeros((fout,), jnp.float32))
    params = dict(
        w0=spectral_normalize(w0), b0=b0,
        w1=spectral_normalize(w1), b1=b1,
        fin=fin, fout=fout, fhidden=fhidden,
    )
    if fin != fout:
        ws = _kaiming_uniform(ks[4], (fout, fin, 1, 1), fin)
        params["ws"] = spectral_normalize(ws)
    return params


# ----------------------------------------------------------------------------
# Pallas kernel: whole block fused; grid over (batch, row-strip)
# ----------------------------------------------------------------------------
def _round_up(n, m):
    return ((n + m - 1) // m) * m


def _gated_resnet_kernel(*refs, Wp, cin_p, chid_p, per_tap, learned_shortcut,
                         beta):
    """One (batch, row-strip) window.  Spatial positions live on the lane axis."""
    if learned_shortcut and per_tap:
        x_ref, mask_ref, w0_ref, b0_ref, w1_ref, b1_ref, ws_ref, out_ref = refs
    else:
        x_ref, mask_ref, w0_ref, b0_ref, w1_ref, b1_ref, out_ref = refs
        ws_ref = None

    x = x_ref[0, 0]            # (cin_p, L) f32, zero ring + zero lane tail
    mask = mask_ref[0]         # (1, L) f32, 1.0 only at true interior pixels
    L = x.shape[-1]
    cdt = w0_ref.dtype         # MXU operand dtype (f32 or bf16)

    # Flat-lane offsets of the 9 taps of a 3x3 conv on the padded grid.
    offsets = tuple(dy * Wp + dx for dy in (-1, 0, 1) for dx in (-1, 0, 1))

    def tap(a, t):
        off = offsets[t]
        if off == 0:
            return a
        # shifted[p] == a[p + off]; XLU lane rotation (cheap, separate slot).
        return pltpu.roll(a, shift=(-off) % L, axis=1)

    def conv3x3(w_ref, a, extra_cols=None):
        """3x3 conv as MXU matmul(s); `a` already in compute dtype."""
        if per_tap:
            # Per-tap accumulation: never materializes the 9x im2col slab.
            acc = jnp.dot(w_ref[0], tap(a, 0), preferred_element_type=jnp.float32)
            for t in range(1, 9):
                acc = acc + jnp.dot(w_ref[t], tap(a, t),
                                    preferred_element_type=jnp.float32)
            return acc
        # Small-channel path: one fused matmul over the stacked contraction.
        cols = [tap(a, t) for t in range(9)]
        if extra_cols is not None:
            cols.append(extra_cols)            # fused 1x1 shortcut columns
        return jnp.dot(w_ref[...], jnp.concatenate(cols, axis=0),
                       preferred_element_type=jnp.float32)

    # conv_0(actvn(x)).  Cast once BEFORE the rolls.
    a0 = jnp.maximum(x, 0.2 * x).astype(cdt)
    h = conv3x3(w0_ref, a0) + b0_ref[...]
    # actvn + re-zero the padding ring / lane tail.  The mask multiply is
    # REQUIRED for correctness (it is conv_1's zero-padding boundary condition
    # and guards the circular roll wraparound) — do not remove.
    h = jnp.maximum(h, 0.2 * h) * mask
    hc = h.astype(cdt)

    # alpha*conv_1(actvn(.)) — alpha pre-folded into w1/b1 wrapper-side —
    # with the 1x1 learned shortcut fused into the same contraction.
    xc = x.astype(cdt) if learned_shortcut else None
    if per_tap:
        dx = conv3x3(w1_ref, hc)
        if learned_shortcut:
            dx = dx + jnp.dot(ws_ref[...], xc, preferred_element_type=jnp.float32)
    else:
        dx = conv3x3(w1_ref, hc, extra_cols=xc)

    out = dx + b1_ref[...] + beta
    if not learned_shortcut:
        out = out + x                     # identity shortcut (cin_p == fout_p)
    out_ref[0, 0] = out.astype(out_ref.dtype)


def _auto_strip_rows(H, Wp, cin_p, chid_p, fout_p, cbytes, per_tap,
                     budget_bytes=12 << 20):
    """Largest strip height whose per-step VMEM footprint stays under budget."""
    per_row = Wp * (2 * 4 * (cin_p + fout_p)                     # 2x in/out blocks
                    + cin_p * cbytes                             # a0 cast
                    + chid_p * (4 + cbytes)                      # h + hc
                    + fout_p * 4                                 # dx accumulator
                    + (1 if per_tap else 9) * max(cin_p, chid_p) * cbytes
                    + cin_p * cbytes)                            # shortcut cast
    return int(max(1, min(H, budget_bytes // max(per_row, 1))))


def gated_resnet_block(x_nchw, params, alpha=1.0, beta=0.0,
                       compute_dtype=jnp.float32, strip_rows=None,
                       per_tap=None, per_tap_k_threshold=256):
    """Forward pass of GatedResnetBlock. x_nchw: (B, fin, H, W) float32."""
    fin, fout, chid = params["fin"], params["fout"], params["fhidden"]
    learned_shortcut = fin != fout
    B, C, H, W = x_nchw.shape
    assert C == fin
    alpha = float(alpha)
    beta = float(beta)

    cbytes = jnp.dtype(compute_dtype).itemsize
    cpad = 8 if cbytes >= 4 else 16        # bf16 operands want 16-row alignment
    cin_p = _round_up(fin, cpad)
    chid_p = _round_up(chid, cpad)
    fout_p = _round_up(fout, cpad)
    if per_tap is None:                    # per-tap accumulation once K is big
        per_tap = 9 * max(cin_p, chid_p) > per_tap_k_threshold

    Wp = W + 2
    if strip_rows is None:
        strip_rows = _auto_strip_rows(H, Wp, cin_p, chid_p, fout_p, cbytes, per_tap)
    S = int(max(1, min(strip_rows, H)))
    n_strips = -(-H // S)
    H_pad = n_strips * S
    nwin = (S + 4) * Wp                    # rows per strip incl. 2-row halo
    Lstrip = _round_up(nwin, 128)          # lane-dense flattened window

    # --- inputs: zero-pad channels, 2-row top/bottom + 1-col ring, strip it ---
    xp = jnp.pad(x_nchw.astype(jnp.float32),
                 ((0, 0), (0, cin_p - fin), (2, (H_pad - H) + 2), (1, 1)))
    row_idx = (jnp.arange(n_strips)[:, None] * S
               + jnp.arange(S + 4)[None, :])                 # (n_strips, S+4)
    x_str = jnp.moveaxis(xp[:, :, row_idx, :], 2, 1)         # (B, ns, cin_p, S+4, Wp)
    x_str = x_str.reshape(B, n_strips, cin_p, nwin)
    x_str = jnp.pad(x_str, ((0, 0), (0, 0), (0, 0), (0, Lstrip - nwin)))

    # Interior-pixel mask on the same strip layout (zero at ring / extra pad / tail).
    m = jnp.zeros((H_pad + 4, Wp), jnp.float32).at[2:2 + H, 1:1 + W].set(1.0)
    m_str = m[row_idx, :].reshape(n_strips, nwin)
    m_str = jnp.pad(m_str, ((0, 0), (0, Lstrip - nwin)))[:, None, :]

    # --- weights: tap-major layout; alpha folded into conv_1; shortcut fused ---
    w0p = jnp.pad(params["w0"],
                  ((0, chid_p - chid), (0, cin_p - fin), (0, 0), (0, 0)))
    w1p = jnp.pad(alpha * params["w1"],
                  ((0, fout_p - fout), (0, chid_p - chid), (0, 0), (0, 0)))
    b0p = jnp.pad(params["b0"], (0, chid_p - chid)).reshape(chid_p, 1)
    b1p = jnp.pad(alpha * params["b1"], (0, fout_p - fout)).reshape(fout_p, 1)
    ws_p = None
    if learned_shortcut:
        ws_p = jnp.pad(params["ws"][:, :, 0, 0],
                       ((0, fout_p - fout), (0, cin_p - fin)))

    if per_tap:
        w0x = jnp.transpose(w0p, (2, 3, 0, 1)).reshape(9, chid_p, cin_p)
        w1x = jnp.transpose(w1p, (2, 3, 0, 1)).reshape(9, fout_p, chid_p)
        w0_spec = pl.BlockSpec((9, chid_p, cin_p), lambda b, s: (0, 0, 0))
        w1_spec = pl.BlockSpec((9, fout_p, chid_p), lambda b, s: (0, 0, 0))
    else:
        w0x = jnp.transpose(w0p, (0, 2, 3, 1)).reshape(chid_p, 9 * cin_p)
        w1x = jnp.transpose(w1p, (0, 2, 3, 1)).reshape(fout_p, 9 * chid_p)
        if learned_shortcut:               # fuse 1x1 shortcut into conv_1's K
            w1x = jnp.concatenate([w1x, ws_p], axis=1)
        w0_spec = pl.BlockSpec(w0x.shape, lambda b, s: (0, 0))
        w1_spec = pl.BlockSpec(w1x.shape, lambda b, s: (0, 0))

    args = [x_str, m_str, w0x.astype(compute_dtype), b0p,
            w1x.astype(compute_dtype), b1p]
    in_specs = [
        pl.BlockSpec((1, 1, cin_p, Lstrip), lambda b, s: (b, s, 0, 0)),
        pl.BlockSpec((1, 1, Lstrip), lambda b, s: (s, 0, 0)),
        w0_spec,
        pl.BlockSpec((chid_p, 1), lambda b, s: (0, 0)),
        w1_spec,
        pl.BlockSpec((fout_p, 1), lambda b, s: (0, 0)),
    ]
    if learned_shortcut and per_tap:       # shortcut = 10th accumulation step
        args.append(ws_p.astype(compute_dtype))
        in_specs.append(pl.BlockSpec((fout_p, cin_p), lambda b, s: (0, 0)))

    kernel = functools.partial(
        _gated_resnet_kernel, Wp=Wp, cin_p=cin_p, chid_p=chid_p,
        per_tap=per_tap, learned_shortcut=learned_shortcut, beta=beta)

    # --- cost estimate + VMEM budget (capped at v7x's 64 MiB physical) ---
    k1 = 9 * chid_p + (cin_p if learned_shortcut else 0)
    flops = 2 * B * n_strips * Lstrip * (9 * cin_p * chid_p + k1 * fout_p)
    w_bytes = cbytes * (w0x.size + w1x.size
                        + (ws_p.size if (learned_shortcut and per_tap) else 0))
    bytes_accessed = (4 * (x_str.size + B * n_strips * fout_p * Lstrip
                           + m_str.size + b0p.size + b1p.size) + w_bytes)
    interm = Lstrip * (cin_p * cbytes + chid_p * (4 + cbytes) + fout_p * 4
                       + (1 if per_tap else 9) * max(cin_p, chid_p) * cbytes
                       + (cin_p * cbytes if learned_shortcut else 0))
    blk_bytes = 4 * Lstrip * (cin_p + fout_p)
    const_bytes = w_bytes + 4 * (chid_p + fout_p + Lstrip)
    vmem_limit = int(min(max(2 * (2 * blk_bytes + 2 * const_bytes + interm)
                             + (2 << 20), 32 << 20), 64 << 20))

    out_str = pl.pallas_call(
        kernel,
        out_shape=jax.ShapeDtypeStruct((B, n_strips, fout_p, Lstrip), jnp.float32),
        grid_spec=pltpu.PrefetchScalarGridSpec(
            num_scalar_prefetch=0,
            grid=(B, n_strips),
            in_specs=in_specs,
            out_specs=pl.BlockSpec((1, 1, fout_p, Lstrip),
                                   lambda b, s: (b, s, 0, 0)),
        ),
        compiler_params=pltpu.CompilerParams(
            dimension_semantics=("parallel", "parallel"),
            vmem_limit_bytes=vmem_limit),
        cost_estimate=pl.CostEstimate(flops=int(flops), transcendentals=0,
                                      bytes_accessed=int(bytes_accessed)),
    )(*args)

    # Reassemble strips and crop halo / channel / row padding (pure XLA).
    out = out_str[:, :, :fout, :nwin].reshape(B, n_strips, fout, S + 4, Wp)
    out = out[:, :, :, 2:2 + S, 1:1 + W]                 # (B, ns, fout, S, W)
    out = out.transpose(0, 2, 1, 3, 4).reshape(B, fout, n_strips * S, W)
    return out[:, :, :H, :]


# ----------------------------------------------------------------------------
# Pure-JAX reference (for correctness check only)
# ----------------------------------------------------------------------------
def _ref_forward(x_nchw, params, alpha=1.0, beta=0.0):
    def conv(x, w, b, pad):
        y = lax.conv_general_dilated(
            x, w, window_strides=(1, 1), padding=[(pad, pad), (pad, pad)],
            dimension_numbers=("NCHW", "OIHW", "NCHW"))
        if b is not None:
            y = y + b.reshape(1, -1, 1, 1)
        return y

    a = lambda v: jnp.where(v > 0, v, 0.2 * v)
    if params["fin"] != params["fout"]:
        x_s = conv(x_nchw, params["ws"], None, 0)
    else:
        x_s = x_nchw
    dx = conv(a(x_nchw), params["w0"], params["b0"], 1)
    dx = conv(a(dx), params["w1"], params["b1"], 1)
    return x_s + alpha * dx + beta


if __name__ == "__main__":
    key = jax.random.PRNGKey(0)
    k_x, k_p, k_x2, k_p2 = jax.random.split(key, 4)

    B, fin, fout, H, W = 2, 4, 8, 16, 16
    x = jax.random.normal(k_x, (B, fin, H, W), jnp.float32)
    params = init_gated_resnet_block_params(k_p, fin, fout)
    ref = jax.block_until_ready(_ref_forward(x, params, alpha=1.0, beta=0.0))

    # Case 1: learned 1x1 shortcut, f32, auto strips (single strip), fused im2col.
    out = jax.block_until_ready(gated_resnet_block(x, params))
    assert out.shape == (B, fout, H, W)
    assert jnp.allclose(out, ref, atol=1e-4, rtol=1e-4), "f32 mismatch (case 1)"

    # Case 2: identity shortcut, alpha/beta != default, forced per-tap MXU
    # accumulation, strip_rows=6 (3 strips, H % S != 0 path).
    x2 = jax.random.normal(k_x2, (B, 8, H, W), jnp.float32)
    params2 = init_gated_resnet_block_params(k_p2, 8, 8)
    out2 = jax.block_until_ready(
        gated_resnet_block(x2, params2, alpha=0.7, beta=0.1,
                           strip_rows=6, per_tap=True))
    ref2 = jax.block_until_ready(_ref_forward(x2, params2, alpha=0.7, beta=0.1))
    assert jnp.allclose(out2, ref2, atol=1e-4, rtol=1e-4), "f32 mismatch (case 2)"

    # Case 3: learned shortcut, per-tap + separate 1x1 accumulation, 4 strips.
    out3 = jax.block_until_ready(
        gated_resnet_block(x, params, strip_rows=4, per_tap=True))
    assert jnp.allclose(out3, ref, atol=1e-4, rtol=1e-4), "f32 mismatch (case 3)"

    # Case 4: bf16 MXU-operand path (16-row channel padding), 2 strips.
    out_bf16 = jax.block_until_ready(
        gated_resnet_block(x, params, compute_dtype=jnp.bfloat16, strip_rows=8))
    assert jnp.allclose(out_bf16, ref, atol=1e-1, rtol=1e-1), "bf16 mismatch (case 4)"

    print("KERNEL_OK")
</pallas_src>

<mosaic_0001>
module attributes {stable_mosaic.version = 11 : i64} {
  func.func @_gated_resnet_kernel(%arg0: i32, %arg1: i32, %arg2: memref<1x1x8x384xf32, #tpu.memory_space<vmem>>, %arg3: memref<1x1x384xf32, #tpu.memory_space<vmem>>, %arg4: memref<8x72xf32, #tpu.memory_space<vmem>>, %arg5: memref<8x1xf32, #tpu.memory_space<vmem>>, %arg6: memref<8x80xf32, #tpu.memory_space<vmem>>, %arg7: memref<8x1xf32, #tpu.memory_space<vmem>>, %arg8: memref<1x1x8x384xf32, #tpu.memory_space<vmem>>) attributes {dimension_semantics = [#tpu.dimension_semantics<parallel>, #tpu.dimension_semantics<parallel>], iteration_bounds = array<i64: 2, 1>, scalar_prefetch = 0 : i64, scratch_operands = 0 : i64, tpu.core_type = #tpu.core_type<tc>, window_params = [{transform_indices = @transform_0, window_bounds = array<i64: 1, 1, 8, 384>}, {transform_indices = @transform_1, window_bounds = array<i64: 1, 1, 384>}, {pipeline_mode = #tpu.pipeline_mode<synchronous>, transform_indices = @transform_2, window_bounds = array<i64: 8, 72>}, {pipeline_mode = #tpu.pipeline_mode<synchronous>, transform_indices = @transform_3, window_bounds = array<i64: 8, 1>}, {pipeline_mode = #tpu.pipeline_mode<synchronous>, transform_indices = @transform_4, window_bounds = array<i64: 8, 80>}, {pipeline_mode = #tpu.pipeline_mode<synchronous>, transform_indices = @transform_5, window_bounds = array<i64: 8, 1>}, {transform_indices = @transform_6, window_bounds = array<i64: 1, 1, 8, 384>}]} {
    %c0 = arith.constant 0 : index
    %c0_0 = arith.constant 0 : index
    %c0_1 = arith.constant 0 : index
    %c0_2 = arith.constant 0 : index
    %0 = vector.load %arg2[%c0, %c0_0, %c0_1, %c0_2] : memref<1x1x8x384xf32, #tpu.memory_space<vmem>>, vector<1x1x8x384xf32>
    %1 = vector.shape_cast %0 : vector<1x1x8x384xf32> to vector<8x384xf32>
    %c0_3 = arith.constant 0 : index
    %c0_4 = arith.constant 0 : index
    %c0_5 = arith.constant 0 : index
    %2 = vector.load %arg3[%c0_3, %c0_4, %c0_5] : memref<1x1x384xf32, #tpu.memory_space<vmem>>, vector<1x1x384xf32>
    %3 = vector.shape_cast %2 : vector<1x1x384xf32> to vector<1x384xf32>
    %cst = arith.constant 2.000000e-01 : f32
    %4 = vector.broadcast %cst : f32 to vector<8x384xf32>
    %5 = arith.mulf %4, %1 : vector<8x384xf32>
    %6 = arith.maximumf %1, %5 : vector<8x384xf32>
    %c19_i32 = arith.constant 19 : i32
    %7 = tpu.dynamic_rotate %6 by %c19_i32 dim 1 : vector<8x384xf32>, i32 -> vector<8x384xf32>
    %c18_i32 = arith.constant 18 : i32
    %8 = tpu.dynamic_rotate %6 by %c18_i32 dim 1 : vector<8x384xf32>, i32 -> vector<8x384xf32>
    %c17_i32 = arith.constant 17 : i32
    %9 = tpu.dynamic_rotate %6 by %c17_i32 dim 1 : vector<8x384xf32>, i32 -> vector<8x384xf32>
    %c1_i32 = arith.constant 1 : i32
    %10 = tpu.dynamic_rotate %6 by %c1_i32 dim 1 : vector<8x384xf32>, i32 -> vector<8x384xf32>
    %c383_i32 = arith.constant 383 : i32
    %11 = tpu.dynamic_rotate %6 by %c383_i32 dim 1 : vector<8x384xf32>, i32 -> vector<8x384xf32>
    %c367_i32 = arith.constant 367 : i32
    %12 = tpu.dynamic_rotate %6 by %c367_i32 dim 1 : vector<8x384xf32>, i32 -> vector<8x384xf32>
    %c366_i32 = arith.constant 366 : i32
    %13 = tpu.dynamic_rotate %6 by %c366_i32 dim 1 : vector<8x384xf32>, i32 -> vector<8x384xf32>
    %c365_i32 = arith.constant 365 : i32
    %14 = tpu.dynamic_rotate %6 by %c365_i32 dim 1 : vector<8x384xf32>, i32 -> vector<8x384xf32>
    %c0_6 = arith.constant 0 : index
    %c0_7 = arith.constant 0 : index
    %15 = vector.load %arg4[%c0_6, %c0_7] : memref<8x72xf32, #tpu.memory_space<vmem>>, vector<8x72xf32>
    %16 = tpu.concatenate %7, %8, %9, %10, %6, %11, %12, %13, %14 in 0 : vector<8x384xf32>, vector<8x384xf32>, vector<8x384xf32>, vector<8x384xf32>, vector<8x384xf32>, vector<8x384xf32>, vector<8x384xf32>, vector<8x384xf32>, vector<8x384xf32> -> vector<72x384xf32>
    %cst_8 = arith.constant dense<0.000000e+00> : vector<8x384xf32>
    %17 = tpu.matmul %15, %16, %cst_8 {dimension_numbers = #tpu.dot_dimension_numbers<[1], [0], [0], [1], [0, 0, 1, 1], [], []>} : vector<8x72xf32>, vector<72x384xf32>, vector<8x384xf32> -> vector<8x384xf32>
    %c0_9 = arith.constant 0 : index
    %c0_10 = arith.constant 0 : index
    %18 = vector.load %arg5[%c0_9, %c0_10] : memref<8x1xf32, #tpu.memory_space<vmem>>, vector<8x1xf32>
    %19 = vector.broadcast %18 : vector<8x1xf32> to vector<8x384xf32>
    %20 = arith.addf %17, %19 : vector<8x384xf32>
    %cst_11 = arith.constant 2.000000e-01 : f32
    %21 = vector.broadcast %cst_11 : f32 to vector<8x384xf32>
    %22 = arith.mulf %21, %20 : vector<8x384xf32>
    %23 = arith.maximumf %20, %22 : vector<8x384xf32>
    %24 = vector.broadcast %3 : vector<1x384xf32> to vector<8x384xf32>
    %25 = arith.mulf %23, %24 : vector<8x384xf32>
    %c19_i32_12 = arith.constant 19 : i32
    %26 = tpu.dynamic_rotate %25 by %c19_i32_12 dim 1 : vector<8x384xf32>, i32 -> vector<8x384xf32>
    %c18_i32_13 = arith.constant 18 : i32
    %27 = tpu.dynamic_rotate %25 by %c18_i32_13 dim 1 : vector<8x384xf32>, i32 -> vector<8x384xf32>
    %c17_i32_14 = arith.constant 17 : i32
    %28 = tpu.dynamic_rotate %25 by %c17_i32_14 dim 1 : vector<8x384xf32>, i32 -> vector<8x384xf32>
    %c1_i32_15 = arith.constant 1 : i32
    %29 = tpu.dynamic_rotate %25 by %c1_i32_15 dim 1 : vector<8x384xf32>, i32 -> vector<8x384xf32>
    %c383_i32_16 = arith.constant 383 : i32
    %30 = tpu.dynamic_rotate %25 by %c383_i32_16 dim 1 : vector<8x384xf32>, i32 -> vector<8x384xf32>
    %c367_i32_17 = arith.constant 367 : i32
    %31 = tpu.dynamic_rotate %25 by %c367_i32_17 dim 1 : vector<8x384xf32>, i32 -> vector<8x384xf32>
    %c366_i32_18 = arith.constant 366 : i32
    %32 = tpu.dynamic_rotate %25 by %c366_i32_18 dim 1 : vector<8x384xf32>, i32 -> vector<8x384xf32>
    %c365_i32_19 = arith.constant 365 : i32
    %33 = tpu.dynamic_rotate %25 by %c365_i32_19 dim 1 : vector<8x384xf32>, i32 -> vector<8x384xf32>
    %c0_20 = arith.constant 0 : index
    %c0_21 = arith.constant 0 : index
    %34 = vector.load %arg6[%c0_20, %c0_21] : memref<8x80xf32, #tpu.memory_space<vmem>>, vector<8x80xf32>
    %35 = tpu.concatenate %26, %27, %28, %29, %25, %30, %31, %32, %33, %1 in 0 : vector<8x384xf32>, vector<8x384xf32>, vector<8x384xf32>, vector<8x384xf32>, vector<8x384xf32>, vector<8x384xf32>, vector<8x384xf32>, vector<8x384xf32>, vector<8x384xf32>, vector<8x384xf32> -> vector<80x384xf32>
    %cst_22 = arith.constant dense<0.000000e+00> : vector<8x384xf32>
    %36 = tpu.matmul %34, %35, %cst_22 {dimension_numbers = #tpu.dot_dimension_numbers<[1], [0], [0], [1], [0, 0, 1, 1], [], []>} : vector<8x80xf32>, vector<80x384xf32>, vector<8x384xf32> -> vector<8x384xf32>
    %c0_23 = arith.constant 0 : index
    %c0_24 = arith.constant 0 : index
    %37 = vector.load %arg7[%c0_23, %c0_24] : memref<8x1xf32, #tpu.memory_space<vmem>>, vector<8x1xf32>
    %38 = vector.broadcast %37 : vector<8x1xf32> to vector<8x384xf32>
    %39 = arith.addf %36, %38 : vector<8x384xf32>
    %cst_25 = arith.constant 0.000000e+00 : f32
    %40 = vector.broadcast %cst_25 : f32 to vector<8x384xf32>
    %41 = arith.addf %39, %40 : vector<8x384xf32>
    %c0_26 = arith.constant 0 : index
    %c0_27 = arith.constant 0 : index
    %c0_28 = arith.constant 0 : index
    %c0_29 = arith.constant 0 : index
    %42 = vector.load %arg8[%c0_26, %c0_27, %c0_28, %c0_29] : memref<1x1x8x384xf32, #tpu.memory_space<vmem>>, vector<1x1x8x384xf32>
    %43 = vector.shape_cast %42 : vector<1x1x8x384xf32> to vector<8x384xf32>
    %44 = vector.shape_cast %41 : vector<8x384xf32> to vector<1x1x8x384xf32>
    tpu.vector_store %arg8[%c0_26, %c0_27, %c0_28, %c0_29], %44 {strides = array<i32>} : memref<1x1x8x384xf32, #tpu.memory_space<vmem>>, vector<1x1x8x384xf32>,
    return
  }
  func.func @transform_0(%arg0: i32, %arg1: i32) -> (i32, i32, i32, i32) {
    %c0_i32 = arith.constant 0 : i32
    %c0_i32_0 = arith.constant 0 : i32
    %c0_i32_1 = arith.constant 0 : i32
    return %arg0, %arg1, %c0_i32, %c0_i32_0 : i32, i32, i32, i32
  }
  func.func @transform_1(%arg0: i32, %arg1: i32) -> (i32, i32, i32) {
    %c0_i32 = arith.constant 0 : i32
    %c0_i32_0 = arith.constant 0 : i32
    %c0_i32_1 = arith.constant 0 : i32
    return %arg1, %c0_i32, %c0_i32_0 : i32, i32, i32
  }
  func.func @transform_2(%arg0: i32, %arg1: i32) -> (i32, i32) {
    %c0_i32 = arith.constant 0 : i32
    %c0_i32_0 = arith.constant 0 : i32
    %c0_i32_1 = arith.constant 0 : i32
    return %c0_i32, %c0_i32_0 : i32, i32
  }
  func.func @transform_3(%arg0: i32, %arg1: i32) -> (i32, i32) {
    %c0_i32 = arith.constant 0 : i32
    %c0_i32_0 = arith.constant 0 : i32
    %c0_i32_1 = arith.constant 0 : i32
    return %c0_i32, %c0_i32_0 : i32, i32
  }
  func.func @transform_4(%arg0: i32, %arg1: i32) -> (i32, i32) {
    %c0_i32 = arith.constant 0 : i32
    %c0_i32_0 = arith.constant 0 : i32
    %c0_i32_1 = arith.constant 0 : i32
    return %c0_i32, %c0_i32_0 : i32, i32
  }
  func.func @transform_5(%arg0: i32, %arg1: i32) -> (i32, i32) {
    %c0_i32 = arith.constant 0 : i32
    %c0_i32_0 = arith.constant 0 : i32
    %c0_i32_1 = arith.constant 0 : i32
    return %c0_i32, %c0_i32_0 : i32, i32
  }
  func.func @transform_6(%arg0: i32, %arg1: i32) -> (i32, i32, i32, i32) {
    %c0_i32 = arith.constant 0 : i32
    %c0_i32_0 = arith.constant 0 : i32
    %c0_i32_1 = arith.constant 0 : i32
    return %arg0, %arg1, %c0_i32, %c0_i32_0 : i32, i32, i32, i32
  }
}

</mosaic_0001>

<bundles_post_ra>
// kernel: tpu_custom_call.1
= control target key start
LH: loop header
LB: loop body
LE: loop exit
PB: predicated region body
PF: predicated region fallthrough
CT: control target
= control target key end

     0   :  { %11 = vsyncpa [#allocation3], 0  ;;  %s1783_s0 = inlined_call_operand.hbm [shape: f32[2,1,8,384], index: 0, kind: input, shape index: {}]   ;;  %s1784_s1 = inlined_call_operand.vmem [shape: f32[1,1,384], index: 1, kind: input, shape index: {}]   ;;  %s1785_s2 = inlined_call_operand.vmem [shape: f32[8,72], index: 2, kind: input, shape index: {}]   ;;  %s1786_s3 = inlined_call_operand.vmem [shape: f32[8,1], index: 3, kind: input, shape index: {}]   ;;  %s1787_s4 = inlined_call_operand.vmem [shape: f32[8,80], index: 4, kind: input, shape index: {}]   ;;  %s1788_s5 = inlined_call_operand.vmem [shape: f32[8,1], index: 5, kind: input, shape index: {}]   ;;  %s1789_s6 = inlined_call_operand.hbm [shape: f32[2,1,8,384], index: 6, kind: output, shape index: {}]  }
   0x1   :  { %13 = vsyncpa [#allocation3 + $0x1], 0 }
   0x2   :  { %14 = vsyncpa [#allocation4], 0 }
   0x3   :  { %16 = vsyncpa [#allocation4 + $0x1], 0  ;;  %s1378_s21 = smov 0   ;;  %s1380_s22 = smov 0  }
   0x4   :  { %s1382_s23 = smov 0   ;;  %s1384_s24 = smov 0  }
   0x5   :  { %s1386_s25 = smov 0   ;;  %s1388_s26 = smov 0  }
   0x6 LB: > { %s918_s27 = sadd.s32 4294967295, %s1327_s26   ;;  %s919_s28 = sadd.s32 4294967294, %s1327_s26   ;;  %s1327_s26 = sphi %s1388_s26, %s22_s26   ;;  %s1323_s25 = sphi %s1386_s25, %s1804_s25   ;;  %s1319_s24 = sphi %s1384_s24, %s1803_s24   ;;  %s1315_s23 = sphi %s1382_s23, %s1802_s23   ;;  %s1311_s22 = sphi %s1380_s22, %s1801_s22   ;;  %s1307_s21 = sphi %s1378_s21, %s1800_s21  }
   0x7   : > { %s34_s29 = sadd.s32 1, %s1323_s25  ;;  %s43_s30 = sadd.s32 1, %s1315_s23 }
   0x8   : > { %p36_p0 = scmp.ge.s32.totalorder %s34_s29, 2  ;;  %p50_p1 = scmp.ne.s32.totalorder %s1315_s23, %s1311_s22 }
   0x9   : > { %p51_p2 = scmp.eq.s32.totalorder %s1327_s26, 0  ;;  %p56_p3 = scmp.ne.s32.totalorder %s1311_s22, %s1307_s21 }
   0xa   : > { %s1806_s29 = smov (%p36_p0, %s34_s29), 0  ;;  %p57_p5 = scmp.eq.s32.totalorder %s918_s27, 0 }
   0xb   : > { %p1419_p4 = por %p51_p2, %p50_p1  ;;  %s38_s8 = ssub.s32 %s1323_s25, %s1806_s29 }
   0xc   : > { %p192_p6 = scmp.eq.s32.totalorder %s918_s27, 1  ;;  %p41_p7 = scmp.eq.s32.totalorder %s38_s8, 0 }
   0xd   : > { %p1425_p8 = por %p57_p5, %p56_p3  ;;  %p198_p10 = scmp.eq.s32.totalorder %s919_s28, 1 }
   0xe   : > { %p1429_p9 = por %p192_p6, %p50_p1  ;;  %p1076_p13 = scmp.lt.s32.totalorder %s1327_s26, 2 }
   0xf   : > { %s1434_s11 = scalar_select %p41_p7, %s1315_s23, %s43_s30  }
  0x10   : > { %s1793_s10 = scalar_select %p1429_p9, 1, 0 }
  0x11   : > { %p1436_p11 = por %p198_p10, %p56_p3  ;;  %s237_s13 = sand.u32 1, %s1315_s23  }
  0x12   : > { %s1060_s14 = smul.u32 24, %s237_s13  ;;  %p1446_p0 = pnand %p1076_p13, %p1419_p4 }
  0x13   : > { %s1794_s12 = scalar_select %p1436_p11, 1, 0 }
  0x14   : > { %s1061_s15 = smul.u32 384, %s1323_s25  ;;  %s241_s20 = scalar_lea.vmem [#allocation2], %s1060_s14 }
  0x15   : > { %s251_s27 = sshll.u32 %s241_s20, 4  ;;  %s238_s28 = scalar_lea.sflag [#allocation3], %s237_s13  ;;  %s1456_s27 = int_to_ptr.vmem [resolvable:$true] %s251_s27 }
  0x16   : > { %s1454_s19 = scalar_lea.hbm %s1783_s0, %s1061_s15  ;;  %p1217_p3 = pneg %p1446_p0 }
  0x17   : > { %s1215_s30 = scalar_lea.hbm %s1454_s19, 384  ;;  %s1220_s15 = scalar_lea.hbm %s1783_s0, 768 }
  0x18   : > { %p1216_p2 = scmp.ne.s32.totalorder %s1454_s19, %s1215_s30  ;;  %p1221_p6 = scmp.lt.u32.totalorder %s1454_s19, %s1783_s0 }
  0x19   : > { %p1222_p7 = scmp.lt.u32.totalorder %s1220_s15, %s1215_s30  ;;  %p1224_p13 = scmp.lt.u32.totalorder %s1215_s30, %s1454_s19 }
  0x1a   : > { %p1218_p4 = pnand %p1217_p3, %p1216_p2 }
  0x1b   : > { %p1223_p10 = por %p1222_p7, %p1221_p6 }
  0x1c   : > { %p1219_p5 = pneg %p1218_p4 }
  0x1d   : > { %p1225_p12 = por %p1224_p13, %p1223_p10 }
  0x1f   : > { %p1226_p1 = pnand %p1225_p12, %p1219_p5 }
  0x21   : > { %1229 = shalt.err (!%p1226_p1)
}
  0x22   : > { %s1230_s13 = scalar_lea.vmem %s1456_s27, 384  ;;  %s1329_s14 = smov [#allocation2]  }
  0x23   : > { %p1231_p2 = scmp.ne.s32.totalorder %s1456_s27, %s1230_s13  ;;  %s1235_s20 = sshll.u32 %s1329_s14, 4  ;;  %s1236_s20 = int_to_ptr.vmem [resolvable:$false] %s1235_s20 }
  0x24   : > { %s1237_s7 = scalar_lea.vmem %s1236_s20, 768  ;;  %p1238_p9 = scmp.lt.s32.totalorder %s1456_s27, %s1236_s20 }
  0x25   : > { %p1233_p4 = pnand %p1231_p2, %p1217_p3  ;;  %p1239_p6 = scmp.lt.s32.totalorder %s1237_s7, %s1230_s13 }
  0x27   : > { %p1234_p11 = pneg %p1233_p4  ;;  %p1240_p7 = por %p1239_p6, %p1238_p9 }
  0x29   : > { %p1241_p10 = pnand %p1240_p7, %p1234_p11 }
  0x2b   : > { %1244 = shalt.err (!%p1241_p10)
}
  0x2c   : > { %1071 = dma.hbm_to_vmem [thread:$0]  (!%p1446_p0), %s1454_s19, 384, %s1456_s27, %s238_s28  }
  0x2d   : > { %p256_p12 = scmp.lt.s32.totalorder %s1327_s26, 3  ;;  %p1796_p1 = scmp.ge.s32.totalorder %s1327_s26, 1 }
  0x2f   : > { %p257_p3 = pnand %p1796_p1, %p256_p12 }
  0x30   : > { %s1487_s30 = sand.u32 (!%p257_p3), 1, %s1311_s22  }
  0x31   : > { %260 = sbr.rel (%p257_p3) target bundleno = 815 (0x32f), region = 44  ;;  %s263_s15 = scalar_lea.sflag (!%p257_p3), [#allocation3], %s1487_s30 }
  0x32   : > { %s1062_s8 = smul.u32 (!%p257_p3), 24, %s1487_s30 }
  0x34   : > { %s266_s16 = scalar_lea.vmem (!%p257_p3), [#allocation2], %s1062_s8 }
  0x38   : > { %1298 = dma.done.wait (%p1425_p8), %s263_s15, 384  }
  0x39   : > { %1300 = vsyncadd (%p1425_p8), %s263_s15, 4294966912  ;;  %v1497_v0 = vld [vmem:[%s266_s16 + $0x10] sm:$0xff]  ;;  %v1499_v1 = vld [vmem:[%s266_s16] sm:$0xff]  ;;  %v1330_v9 = vmov 0.0|0.0   ;;  %s1331_s9 = smov 19   ;;  %s1332_s19 = smov 18   ;;  %v319_v15 = vlaneseq }
  0x3a   : > { %v1501_v2 = vld [vmem:[%s266_s16 + $0x8] sm:$0xff]  ;;  %v309_v3 = vmul.f32 0.2, %v1497_v0  ;;  %v307_v4 = vmul.f32 0.2, %v1499_v1  ;;  %1013 = vmatprep.subr.bf16.mxu1 %v1330_v9  ;;  %s1333_s27 = smov 1  }
  0x3b   : > { %v308_v5 = vmul.f32 0.2, %v1501_v2  ;;  %s1334_s28 = smov 17   ;;  %s1335_s17 = smov 127   ;;  %v1337_v12 = vmov 0.0   ;;  %vm1339_vm0 = vmmov 0  }
  0x3c   : > { %v1507_v6 = vmax.f32 %v1497_v0, %v309_v3  ;;  %v1510_v7 = vmax.f32 %v1499_v1, %v307_v4  ;;  %s1336_s18 = smov 110   ;;  %470 = vmatprep.mubr.f32.mxu0 %v1337_v12  ;;  %s1338_s13 = smov 111   ;;  %971 = vmatprep.mubr.msk.f32.mxu1 %vm1339_vm0, %v1337_v12  ;;  %v1340_v13 = vmov 0   ;;  %v396_v14 = vld [vmem:[%s1786_s3] sm:$0xff]  ;;  %v1554_v17 = vand.u32 127, %v319_v15 }
  0x3d   : > { %v1513_v8 = vmax.f32 %v1501_v2, %v308_v5  ;;  %1214 = vset.pattern.permute.xlu0 %v1340_v13  ;;  %1173 = vset.pattern.permute.xlu1 %v1340_v13  ;;  %s1341_s14 = smov 109   ;;  %vm402_vm9 = vcmask 588800   ;;  %vm651_vm10 = vcmask 654336   ;;  %p1797_p9 = scmp.ne.s32.totalorder %s1793_s10, 0 }
  0x3e   : > { %317 = vrot.lane.b32.xlu1 %v1507_v6, %s1331_s9  ;;  %vm321_vm1 = vcmp.lt.s32.totalorder %v1554_v17, 19  ;;  %vm331_vm2 = vcmp.lt.s32.totalorder %v1554_v17, 18  ;;  %vm351_vm3 = vcmp.lt.s32.totalorder %v1554_v17, 1  ;;  %vm341_vm4 = vcmp.lt.s32.totalorder %v1554_v17, 17  ;;  %s1342_s20 = smov [#allocation5]  }
  0x3f   : > { %v1138_v10 = vpack.i.bf16 %v1513_v8, %v1510_v7  ;;  %v1158_v11 = vpack.i.bf16 %v1507_v6, %v1513_v8  ;;  %vm361_vm5 = vcmp.lt.s32.totalorder %v1554_v17, 127  ;;  %vm381_vm6 = vcmp.lt.s32.totalorder %v1554_v17, 110  ;;  %s1249_s7 = sshll.u32 %s1342_s20, 4  ;;  %s1250_s7 = int_to_ptr.vmem [resolvable:$false] %s1249_s7 }
  0x40   : > { %vm371_vm7 = vcmp.lt.s32.totalorder %v1554_v17, 111  ;;  %vm391_vm8 = vcmp.lt.s32.totalorder %v1554_v17, 109 }
  0x41   : > { %1139 = vrot.lane.b32.xlu0 %v1138_v10, %s1331_s9 }
  0x42   : > { %329 = vrot.lane.b32.xlu1 %v1507_v6, %s1332_s19 }
  0x45   : > { %1144 = vrot.lane.b32.xlu0 %v1138_v10, %s1332_s19 }
  0x46   : > { %1154 = vrot.lane.b32.xlu1 %v1138_v10, %s1333_s27 }
  0x49   : > { %1149 = vrot.lane.b32.xlu0 %v1138_v10, %s1334_s28 }
  0x4a   : > { %349 = vrot.lane.b32.xlu1 %v1507_v6, %s1333_s27 }
  0x4d   : > { %339 = vrot.lane.b32.xlu0 %v1507_v6, %s1334_s28 }
  0x4e   : > { %355 = vrot.lane.b32.xlu1 %v1510_v7, %s1335_s17 }
  0x51   : > { %1159 = vrot.lane.b32.xlu0 %v1158_v11, %s1335_s17 }
  0x52   : > { %1169 = vrot.lane.b32.xlu1 %v1158_v11, %s1336_s18 }
  0x55   : > { %1164 = vrot.lane.b32.xlu0 %v1158_v11, %s1338_s13 }
  0x56   : > { %375 = vrot.lane.b32.xlu1 %v1510_v7, %s1336_s18 }
  0x59   : > { %365 = vrot.lane.b32.xlu0 %v1510_v7, %s1338_s13 }
  0x5a   : > { %389 = vrot.lane.b32.xlu1 %v1507_v6, %s1341_s14 }
  0x5d   : > { %387 = vrot.lane.b32.xlu0 %v1513_v8, %s1341_s14 }
  0x5e   : > { %399 = vperm.xlu1 %1173, %v396_v14  }
  0x61   : > { %385 = vrot.lane.b32.xlu0 %v1510_v7, %s1341_s14 }
  0xb0   : > { %v318_v16 = vpop.permute.xlu1 %317 }
  0xb3   : > { %v1140_v18 = vpop.permute.xlu0 %1139 }
  0xb4   : > { %v1142_v19 = vunpack.i.h.bf16 %v1140_v18  ;;  %v1141_v20 = vunpack.i.l.bf16 %v1140_v18  ;;  %v330_v21 = vpop.permute.xlu1 %329 }
  0xb6   : > { %v323_v26 = vsel %vm321_vm1, %v1141_v20, %v1142_v19  ;;  %v322_v27 = vsel %vm321_vm1, %v1142_v19, %v318_v16  ;;  %v324_v35 = vsel %vm321_vm1, %v318_v16, %v1141_v20 }
  0xb7   : > { %v1145_v22 = vpop.permute.xlu0 %1144 }
  0xb8   : > { %v1147_v23 = vunpack.i.h.bf16 %v1145_v22  ;;  %v1146_v24 = vunpack.i.l.bf16 %v1145_v22  ;;  %v1155_v25 = vpop.permute.xlu1 %1154 }
  0xb9   : > { %v1157_v28 = vunpack.i.h.bf16 %v1155_v25  ;;  %v1156_v29 = vunpack.i.l.bf16 %v1155_v25  ;;  %v395_v25 = vld [vmem:[%s1785_s2] sm:$0xff] }
  0xba   : > { %v333_v30 = vsel %vm331_vm2, %v1146_v24, %v1147_v23  ;;  %v332_v31 = vsel %vm331_vm2, %v1147_v23, %v330_v21  ;;  %v334_v36 = vsel %vm331_vm2, %v330_v21, %v1146_v24 }
  0xbb   : > { %v1150_v32 = vpop.permute.xlu0 %1149  ;;  %v997_v33 = vpack.c.bf16 %v333_v30, %v323_v26  ;;  %v1014_v34 = vpack.c.bf16 %v332_v31, %v322_v27  ;;  %v999_v39 = vpack.c.bf16 %v334_v36, %v324_v35  ;;  %v353_v40 = vsel %vm351_vm3, %v1156_v29, %v1157_v28  ;;  %v306_v31 = vld [vmem:[%s1784_s1] sm:$0x7] }
  0xbc   : > { %v1152_v37 = vunpack.i.h.bf16 %v1150_v32  ;;  %v1151_v38 = vunpack.i.l.bf16 %v1150_v32  ;;  %v350_v41 = vpop.permute.xlu1 %349 }
  0xbd   : > { %998 = vmatprep.subr.bf16.mxu0 %v997_v33  ;;  %1015 = vmatpush3.bf16.msra.mxu1 %v1014_v34  ;;  %v352_v42 = vsel %vm351_vm3, %v1157_v28, %v350_v41  ;;  %v354_v43 = vsel %vm351_vm3, %v350_v41, %v1156_v29  ;;  %v555_v28 = vshrl.u32 %v319_v15, 7 }
  0xbe   : > { %1000 = vmatpush1.bf16.msra.mxu0 %v999_v39  ;;  %v343_v44 = vsel %vm341_vm4, %v1151_v38, %v1152_v37  ;;  %1016 = vmatprep.subr.bf16.mxu1 %v1330_v9 }
  0xbf   : > { %v340_v45 = vpop.permute.xlu0 %339  ;;  %v1001_v46 = vpack.c.bf16 %v353_v40, %v343_v44  ;;  %v564_v30 = vsub.s32 2, %v555_v28 }
  0xc0   : > { %v342_v47 = vsel %vm341_vm4, %v1152_v37, %v340_v45  ;;  %v344_v48 = vsel %vm341_vm4, %v340_v45, %v1151_v38  ;;  %v356_v51 = vpop.permute.xlu1 %355  ;;  %v556_v38 = vsub.s32 0, %v555_v28 }
  0xc1   : > { %v1003_v49 = vpack.c.bf16 %v354_v43, %v344_v48  ;;  %v1017_v50 = vpack.c.bf16 %v352_v42, %v342_v47  ;;  %1002 = vmatprep.subr.bf16.mxu0 %v1001_v46  ;;  %v565_v42 = vrot.slane %v306_v31, %v564_v30 }
  0xc2   : > { %v557_v44 = vrot.slane %v306_v31, %v556_v38 }
  0xc3   : > { %v1160_v52 = vpop.permute.xlu0 %1159  ;;  %1004 = vmatpush1.bf16.msra.mxu0 %v1003_v49  ;;  %1018 = vmatpush3.bf16.msra.mxu1 %v1017_v50 }
  0xc4   : > { %v1162_v53 = vunpack.i.h.bf16 %v1160_v52  ;;  %v1161_v54 = vunpack.i.l.bf16 %v1160_v52  ;;  %1019 = vmatprep.subr.bf16.mxu1 %v1330_v9  ;;  %v1170_v55 = vpop.permute.xlu1 %1169 }
  0xc5   : > { %v1172_v56 = vunpack.i.h.bf16 %v1170_v55  ;;  %v1171_v57 = vunpack.i.l.bf16 %v1170_v55 }
  0xc6   : > { %v362_v58 = vsel %vm361_vm5, %v1161_v54, %v1162_v53  ;;  %v364_v59 = vsel %vm361_vm5, %v1162_v53, %v356_v51  ;;  %v363_v63 = vsel %vm361_vm5, %v356_v51, %v1161_v54  ;;  %v645_v53 = vld [vmem:[%s1788_s5] sm:$0xff] }
  0xc7   : > { %v1165_v60 = vpop.permute.xlu0 %1164  ;;  %v1005_v61 = vpack.c.bf16 %v362_v58, %v1513_v8  ;;  %v1020_v62 = vpack.c.bf16 %v364_v59, %v1507_v6  ;;  %v1007_v5 = vpack.c.bf16 %v363_v63, %v1510_v7  ;;  %v382_v10 = vsel %vm381_vm6, %v1171_v57, %v1172_v56 }
  0xc8   : > { %v1167_v3 = vunpack.i.h.bf16 %v1165_v60  ;;  %v1166_v4 = vunpack.i.l.bf16 %v1165_v60  ;;  %v376_v11 = vpop.permute.xlu1 %375 }
  0xc9   : > { %1006 = vmatprep.subr.bf16.mxu0 %v1005_v61  ;;  %1021 = vmatpush3.bf16.msra.mxu1 %v1020_v62  ;;  %v383_v8 = vsel %vm381_vm6, %v376_v11, %v1171_v57  ;;  %v384_v6 = vsel %vm381_vm6, %v1172_v56, %v376_v11 }
  0xca   : > { %1008 = vmatpush1.bf16.msra.mxu0 %v1007_v5  ;;  %v372_v13 = vsel %vm371_vm7, %v1166_v4, %v1167_v3  ;;  %1022 = vmatprep.subr.bf16.mxu1 %v1330_v9 }
  0xcb   : > { %v366_v14 = vpop.permute.xlu0 %365  ;;  %v1009_v7 = vpack.c.bf16 %v382_v10, %v372_v13 }
  0xcc   : > { %v373_v16 = vsel %vm371_vm7, %v366_v14, %v1166_v4  ;;  %v374_v18 = vsel %vm371_vm7, %v1167_v3, %v366_v14  ;;  %v390_v21 = vpop.permute.xlu1 %389 }
  0xcd   : > { %v1011_v19 = vpack.c.bf16 %v383_v8, %v373_v16  ;;  %v1023_v20 = vpack.c.bf16 %v384_v6, %v374_v18  ;;  %1010 = vmatprep.subr.bf16.mxu0 %v1009_v7 }
  0xcf   : > { %v388_v22 = vpop.permute.xlu0 %387  ;;  %1012 = vmatpush1.bf16.msra.mxu0 %v1011_v19  ;;  %1024 = vmatpush3.bf16.msra.mxu1 %v1023_v20 }
  0xd0   : > { %v392_v23 = vsel %vm391_vm8, %v388_v22, %v390_v21  ;;  %969 = vmatprep.subr.mxu1 %v1337_v12 }
  0xd1   : > { %422 = vmatprep.subr.mxu0 %v392_v23 }
  0xd3   : > { %v386_v24 = vpop.permute.xlu0 %385 }
  0xd4   : > { %v393_v26 = vsel %vm391_vm8, %v386_v24, %v388_v22  ;;  %v394_v27 = vsel %vm391_vm8, %v390_v21, %v386_v24 }
  0xd5   : > { %423 = vmatpush1.msra.mxu0 %v393_v26  ;;  %970 = vmatpush3.msra.mxu1 %v394_v27 }
  0xd6   : > { %925 = vmatmul.mubr.msk.f32.vlgmr.msra.gmra.mrb[0].mxu0 %vm402_vm9, %v395_v25  ;;  %972 = vmatmul.mubr.msk.f32.vlgmr.msra.gmra.mrb[0].mxu1 %vm402_vm9, %v395_v25 }
  0xd7   : > { %1045 = vmatprep.subr.bf16.mxu1 %v1330_v9  ;;  %719 = vmatprep.mubr.f32.mxu0 %v1337_v12 }
  0xd8   : > { %994 = vmatprep.mubr.msk.f32.mxu1 %vm1339_vm0, %v1337_v12  ;;  %v560_v12 = vsub.s32 1, %v555_v28 }
  0xda   : > { %v561_v48 = vrot.slane %v306_v31, %v560_v12 }
  0xdd   : > { %v400_v29 = vpop.permute.xlu1 %399 }
 0x1a9   : > { %v472_v32 = vpop.f32.mrb[0].mxu0  ;;  %v543_v33 = vpop.f32.mrb[0].mxu1 }
 0x1aa   : > { %v473_v34 = vadd.f32 %v472_v32, %v400_v29  ;;  %v544_v35 = vadd.f32 %v543_v33, %v400_v29  ;;  %v474_v36 = vpop.f32.mrb[1].mxu0  ;;  %v973_v37 = vpop.f32.mrb[1].mxu1 }
 0x1ab   : > { %v475_v39 = vadd.f32 %v474_v36, %v400_v29 }
 0x1ac   : > { %v547_v40 = vmul.f32 0.2, %v473_v34  ;;  %v549_v41 = vmul.f32 0.2, %v544_v35 }
 0x1ad   : > { %v548_v43 = vmul.f32 0.2, %v475_v39 }
 0x1ae   : > { %v552_v15 = vmax.f32 %v544_v35, %v549_v41  ;;  %v550_v45 = vmax.f32 %v473_v34, %v547_v40 }
 0x1af   : > { %v551_v47 = vmax.f32 %v475_v39, %v548_v43 }
 0x1b0   : > { %v1630_v46 = vmul.f32 %v565_v42, %v552_v15  ;;  %v1636_v49 = vmul.f32 %v557_v44, %v550_v45 }
 0x1b1   : > { %v1638_v50 = vmul.f32 %v561_v48, %v551_v47 }
 0x1b2   : > { %585 = vrot.lane.b32.xlu1 %v1630_v46, %s1332_s19  ;;  %576 = vrot.lane.b32.xlu0 %v1630_v46, %s1331_s9 }
 0x1b3   : > { %v1179_v51 = vpack.i.bf16 %v1638_v50, %v1636_v49  ;;  %v1204_v52 = vpack.i.bf16 %v1630_v46, %v1638_v50 }
 0x1b6   : > { %603 = vrot.lane.b32.xlu1 %v1630_v46, %s1333_s27  ;;  %594 = vrot.lane.b32.xlu0 %v1630_v46, %s1334_s28 }
 0x1ba   : > { %1180 = vrot.lane.b32.xlu1 %v1179_v51, %s1332_s19  ;;  %1175 = vrot.lane.b32.xlu0 %v1179_v51, %s1331_s9  ;;  %s1251_s9 = scalar_lea.vmem %s1250_s7, 768 }
 0x1be   : > { %1190 = vrot.lane.b32.xlu1 %v1179_v51, %s1333_s27  ;;  %1185 = vrot.lane.b32.xlu0 %v1179_v51, %s1334_s28 }
 0x1c2   : > { %608 = vrot.lane.b32.xlu1 %v1636_v49, %s1335_s17  ;;  %617 = vrot.lane.b32.xlu0 %v1636_v49, %s1338_s13 }
 0x1c6   : > { %1205 = vrot.lane.b32.xlu1 %v1204_v52, %s1336_s18  ;;  %1195 = vrot.lane.b32.xlu0 %v1204_v52, %s1335_s17  ;;  %s1063_s17 = smul.u32 384, %s1319_s24  ;;  %s803_s24 = scalar_lea.sflag [#allocation4], %s1487_s30 }
 0x1c8   : > { %s1734_s16 = scalar_lea.hbm %s1789_s6, %s1063_s17 }
 0x1ca   : > { %626 = vrot.lane.b32.xlu1 %v1636_v49, %s1336_s18  ;;  %1200 = vrot.lane.b32.xlu0 %v1204_v52, %s1338_s13  ;;  %s298_s18 = scalar_lea.vmem [#allocation5], %s1062_s8 }
 0x1cb   : > { %s819_s13 = sshll.u32 %s298_s18, 4  ;;  %s1736_s13 = int_to_ptr.vmem [resolvable:$true] %s819_s13 }
 0x1cc   : > { %s1245_s8 = scalar_lea.vmem %s1736_s13, 384  ;;  %p1252_p5 = scmp.lt.s32.totalorder %s1736_s13, %s1250_s7 }
 0x1cd   : > { %p1246_p8 = scmp.ne.s32.totalorder %s1736_s13, %s1245_s8  ;;  %p1253_p13 = scmp.lt.s32.totalorder %s1251_s9, %s1245_s8 }
 0x1ce   : > { %635 = vrot.lane.b32.xlu1 %v1636_v49, %s1341_s14  ;;  %1210 = vrot.lane.b32.xlu0 %v1204_v52, %s1341_s14 }
 0x1cf   : > { %p1247_p11 = pnand %p1246_p8, %p1797_p9  ;;  %p1254_p2 = por %p1253_p13, %p1252_p5 }
 0x1d1   : > { %p1248_p0 = pneg %p1247_p11 }
 0x1d2   : > { %648 = vperm.xlu0 %1214, %v645_v53  }
 0x1d3   : > { %p1255_p4 = pnand %p1254_p2, %p1248_p0 }
 0x224   : > { %v586_v54 = vpop.permute.xlu1 %585  ;;  %v577_v55 = vpop.permute.xlu0 %576 }
 0x228   : > { %v604_v56 = vpop.permute.xlu1 %603  ;;  %v595_v57 = vpop.permute.xlu0 %594 }
 0x22c   : > { %v1181_v58 = vpop.permute.xlu1 %1180  ;;  %v1176_v59 = vpop.permute.xlu0 %1175 }
 0x22d   : > { %v1183_v60 = vunpack.i.h.bf16 %v1181_v58  ;;  %v1182_v61 = vunpack.i.l.bf16 %v1181_v58  ;;  %v1178_v62 = vunpack.i.h.bf16 %v1176_v59  ;;  %v1177_v63 = vunpack.i.l.bf16 %v1176_v59 }
 0x22f   : > { %v587_v3 = vsel %vm331_vm2, %v1183_v60, %v586_v54  ;;  %v589_v4 = vsel %vm331_vm2, %v586_v54, %v1182_v61  ;;  %v578_v5 = vsel %vm321_vm1, %v1178_v62, %v577_v55  ;;  %v580_v10 = vsel %vm321_vm1, %v577_v55, %v1177_v63 }
 0x230   : > { %v1046_v11 = vpack.c.bf16 %v587_v3, %v578_v5  ;;  %v1027_v8 = vpack.c.bf16 %v589_v4, %v580_v10  ;;  %v1191_v6 = vpop.permute.xlu1 %1190  ;;  %v1186_v13 = vpop.permute.xlu0 %1185  ;;  %v579_v14 = vsel %vm321_vm1, %v1177_v63, %v1178_v62  ;;  %v588_v7 = vsel %vm331_vm2, %v1182_v61, %v1183_v60  ;;  %v644_v5 = vld [vmem:[%s1787_s4] sm:$0xff] }
 0x231   : > { %v1193_v16 = vunpack.i.h.bf16 %v1191_v6  ;;  %v1192_v18 = vunpack.i.l.bf16 %v1191_v6  ;;  %v1188_v19 = vunpack.i.h.bf16 %v1186_v13  ;;  %v1187_v20 = vunpack.i.l.bf16 %v1186_v13 }
 0x232   : > { %v1025_v21 = vpack.c.bf16 %v588_v7, %v579_v14  ;;  %1047 = vmatpush3.bf16.msra.mxu1 %v1046_v11 }
 0x233   : > { %v605_v22 = vsel %vm351_vm3, %v1193_v16, %v604_v56  ;;  %v607_v23 = vsel %vm351_vm3, %v604_v56, %v1192_v18  ;;  %v596_v24 = vsel %vm341_vm4, %v1188_v19, %v595_v57  ;;  %v598_v25 = vsel %vm341_vm4, %v595_v57, %v1187_v20  ;;  %1048 = vmatprep.subr.bf16.mxu1 %v1330_v9 }
 0x234   : > { %v1049_v26 = vpack.c.bf16 %v605_v22, %v596_v24  ;;  %1026 = vmatprep.subr.bf16.mxu0 %v1025_v21  ;;  %v609_v27 = vpop.permute.xlu1 %608  ;;  %v618_v28 = vpop.permute.xlu0 %617  ;;  %v597_v29 = vsel %vm341_vm4, %v1187_v20, %v1188_v19  ;;  %v606_v30 = vsel %vm351_vm3, %v1192_v18, %v1193_v16  ;;  %v1031_v31 = vpack.c.bf16 %v607_v23, %v598_v25 }
 0x235   : > { %1028 = vmatpush1.bf16.msra.mxu0 %v1027_v8  ;;  %v1029_v32 = vpack.c.bf16 %v606_v30, %v597_v29 }
 0x236   : > { %1050 = vmatpush3.bf16.msra.mxu1 %v1049_v26 }
 0x237   : > { %1030 = vmatprep.subr.bf16.mxu0 %v1029_v32  ;;  %1051 = vmatprep.subr.bf16.mxu1 %v1330_v9 }
 0x238   : > { %v1206_v33 = vpop.permute.xlu1 %1205  ;;  %v1196_v34 = vpop.permute.xlu0 %1195 }
 0x239   : > { %1032 = vmatpush1.bf16.msra.mxu0 %v1031_v31  ;;  %v1198_v35 = vunpack.i.h.bf16 %v1196_v34  ;;  %v1197_v36 = vunpack.i.l.bf16 %v1196_v34  ;;  %v1208_v37 = vunpack.i.h.bf16 %v1206_v33  ;;  %v1207_v38 = vunpack.i.l.bf16 %v1206_v33 }
 0x23b   : > { %v616_v39 = vsel %vm361_vm5, %v1198_v35, %v609_v27  ;;  %v615_v40 = vsel %vm361_vm5, %v609_v27, %v1197_v36  ;;  %v614_v41 = vsel %vm361_vm5, %v1197_v36, %v1198_v35  ;;  %v632_v52 = vsel %vm381_vm6, %v1207_v38, %v1208_v37 }
 0x23c   : > { %v1052_v42 = vpack.c.bf16 %v616_v39, %v1630_v46  ;;  %v1035_v12 = vpack.c.bf16 %v615_v40, %v1636_v49  ;;  %v627_v43 = vpop.permute.xlu1 %626  ;;  %v1201_v15 = vpop.permute.xlu0 %1200  ;;  %v1033_v44 = vpack.c.bf16 %v614_v41, %v1638_v50 }
 0x23d   : > { %v1203_v45 = vunpack.i.h.bf16 %v1201_v15  ;;  %v1202_v47 = vunpack.i.l.bf16 %v1201_v15  ;;  %v633_v48 = vsel %vm381_vm6, %v627_v43, %v1207_v38  ;;  %v634_v51 = vsel %vm381_vm6, %v1208_v37, %v627_v43 }
 0x23e   : > { %1034 = vmatprep.subr.bf16.mxu0 %v1033_v44  ;;  %1053 = vmatpush3.bf16.msra.mxu1 %v1052_v42 }
 0x23f   : > { %v625_v46 = vsel %vm371_vm7, %v1203_v45, %v618_v28  ;;  %v624_v49 = vsel %vm371_vm7, %v618_v28, %v1202_v47  ;;  %1036 = vmatpush1.bf16.msra.mxu0 %v1035_v12  ;;  %1054 = vmatprep.subr.bf16.mxu1 %v1330_v9  ;;  %v623_v50 = vsel %vm371_vm7, %v1202_v47, %v1203_v45 }
 0x240   : > { %v1055_v53 = vpack.c.bf16 %v634_v51, %v625_v46  ;;  %v1039_v54 = vpack.c.bf16 %v633_v48, %v624_v49  ;;  %v1211_v55 = vpop.permute.xlu0 %1210  ;;  %v1037_v56 = vpack.c.bf16 %v632_v52, %v623_v50  ;;  %v636_v59 = vpop.permute.xlu1 %635 }
 0x241   : > { %v1213_v57 = vunpack.i.h.bf16 %v1211_v55  ;;  %v1212_v58 = vunpack.i.l.bf16 %v1211_v55 }
 0x242   : > { %1038 = vmatprep.subr.bf16.mxu0 %v1037_v56  ;;  %1056 = vmatpush3.bf16.msra.mxu1 %v1055_v53 }
 0x243   : > { %v643_v60 = vsel %vm391_vm8, %v1213_v57, %v636_v59  ;;  %v642_v61 = vsel %vm391_vm8, %v636_v59, %v1212_v58  ;;  %1040 = vmatpush1.bf16.msra.mxu0 %v1039_v54  ;;  %1057 = vmatprep.subr.bf16.mxu1 %v1330_v9  ;;  %v641_v62 = vsel %vm391_vm8, %v1212_v58, %v1213_v57 }
 0x244   : > { %v1058_v63 = vpack.c.bf16 %v1497_v0, %v643_v60  ;;  %v1043_v3 = vpack.c.bf16 %v1499_v1, %v642_v61  ;;  %v1041_v4 = vpack.c.bf16 %v1501_v2, %v641_v62 }
 0x246   : > { %1042 = vmatprep.subr.bf16.mxu0 %v1041_v4  ;;  %1059 = vmatpush3.bf16.msra.mxu1 %v1058_v63 }
 0x247   : > { %1044 = vmatpush1.bf16.msra.mxu0 %v1043_v3 }
 0x249   : > { %995 = vmatmul.mubr.msk.f32.vlgmr.msra.gmra.mrb[2].mxu1 %vm651_vm10, %v644_v5 }
 0x24a   : > { %927 = vmatmul.mubr.msk.f32.vlgmr.msra.gmra.mrb[2].mxu0 %vm651_vm10, %v644_v5 }
 0x251   : > { %v649_v9 = vpop.permute.xlu0 %648 }
 0x31c   : > { %v792_v17 = vpop.f32.mrb[2].mxu1 }
 0x31d   : > { %v721_v0 = vpop.f32.mrb[2].mxu0  ;;  %v793_v1 = vadd.f32 %v792_v17, %v649_v9  ;;  %v996_v2 = vpop.f32.mrb[3].mxu1 }
 0x31e   : > { %v722_v10 = vadd.f32 %v721_v0, %v649_v9  ;;  %v723_v11 = vpop.f32.mrb[3].mxu0 }
 0x31f   : > { %801 = vst [vmem:[%s298_s18 + $0x10] sm:$0xff] %v793_v1  ;;  %v724_v8 = vadd.f32 %v723_v11, %v649_v9 }
 0x320   : > { %799 = vst [vmem:[%s298_s18] sm:$0xff] %v722_v10 }
 0x321   : > { %800 = vst [vmem:[%s298_s18 + $0x8] sm:$0xff] %v724_v8 }
 0x322   : > { %1258 = shalt.err (!%p1255_p4)
}
 0x323   : > { %s1259_s30 = scalar_lea.hbm %s1734_s16, 384  ;;  %s1263_s28 = scalar_lea.hbm %s1789_s6, 768 }
 0x324   : > { %p1260_p6 = scmp.ne.s32.totalorder %s1734_s16, %s1259_s30  ;;  %p1264_p12 = scmp.lt.u32.totalorder %s1734_s16, %s1789_s6 }
 0x325   : > { %p1265_p1 = scmp.lt.u32.totalorder %s1263_s28, %s1259_s30  ;;  %p1267_p8 = scmp.lt.u32.totalorder %s1259_s30, %s1734_s16 }
 0x326   : > { %p1261_p7 = pnand %p1260_p6, %p1797_p9 }
 0x327   : > { %p1266_p3 = por %p1265_p1, %p1264_p12 }
 0x328   : > { %p1262_p10 = pneg %p1261_p7 }
 0x329   : > { %p1268_p11 = por %p1267_p8, %p1266_p3 }
 0x32b   : > { %p1269_p0 = pnand %p1268_p11, %p1262_p10 }
 0x32d   : > { %1272 = shalt.err (!%p1269_p0)
}
 0x32e   : > { %1066 = dma.vmem_to_hbm [thread:$0]  (%p1797_p9), %s1736_s13, 384, %s1734_s16, %s803_s24  }
 0x32f PF: > { %s831_s14 = sand.u32 1, %s1307_s21   ;;  %p1798_p5 = scmp.ne.s32.totalorder %s1794_s12, 0 }
 0x330   : > { %p1799_p13 = scmp.ge.s32.totalorder %s1327_s26, 2  ;;  %s832_s15 = scalar_lea.sflag [#allocation4], %s831_s14 }
 0x332   : > { %p1073_p2 = pnand %p1799_p13, %p1798_p5 }
 0x334   : > { %1302 = dma.done.wait (!%p1073_p2), %s832_s15, 384  }
 0x335   : > { %1304 = vsyncadd (!%p1073_p2), %s832_s15, 4294966912  ;;  %s22_s26 = sadd.s32 1, %s1327_s26   ;;  %s1800_s21 = smov %s1311_s22 }
 0x336   : > { %p19_p4 = scmp.ge.s32.totalorder %s22_s26, 4   ;;  %s1801_s22 = smov %s1315_s23 }
 0x337   : > { %s1802_s23 = smov %s1434_s11  ;;  %s1803_s24 = smov %s1323_s25 }
 0x338   : > { %s1804_s25 = smov %s1806_s29  ;;  %21 = sbr.rel (!%p19_p4) target bundleno = 6 (0x6), region = 92 }
 0x33f   :  { %837 = vsyncpa [#allocation3], 1 }
 0x340   :  { %839 = vsyncpa [#allocation3 + $0x1], 1 }
 0x341   :  { %840 = vsyncpa [#allocation4], 1 }
 0x342   :  { %842 = vsyncpa [#allocation4 + $0x1], 1 }

</bundles_post_ra>
